<compile_context>
chip_gen: v6e
topology: v6e:2x2x1
jax: 0.10.0
libtpu: 0.0.40
codegen_flags: <defaults>
</compile_context>

<pallas_src>
import functools
import math

import jax
import jax.numpy as jnp
from jax.experimental import pallas as pl
from jax.experimental.pallas import tpu as pltpu

# ----------------------------- model dims -----------------------------------
B = 2        # batch
S = 8        # sequence length
D = 32       # d_model (== EncoderLayer.size)
H = 4        # attention heads
DK = D // H  # per-head dim
DFF = 64     # feed-forward hidden dim
EPS = 1e-6
NEG_INF = -1e9


# ------------------------------- kernel -------------------------------------
def _encoder_layer_kernel(
    x_ref, bias_ref, vec_ref, wqkv_ref, wo_ref, w1_ref, w2_ref,
    out_ref,
    *, nb, s, d, n_heads, d_k, d_ff, eps,
):
    rows = nb * s
    # Collapse (nb, S, D) -> (nb*S, D): leading-dim-only merge (minor dim kept),
    # so no relayout; lets every LayerNorm / QKV / Wo / FFN matmul run over all
    # fused rows at once.
    x = x_ref[...].reshape(rows, d)

    # Packed small vectors: one DMA stream instead of ten.
    ln1_g = vec_ref[0:1, 0:d]
    ln1_b = vec_ref[1:2, 0:d]
    bqkv = vec_ref[2:3, 0:3 * d]
    bo = vec_ref[3:4, 0:d]
    ln2_g = vec_ref[4:5, 0:d]
    ln2_b = vec_ref[5:6, 0:d]
    b1 = vec_ref[6:7, 0:d_ff]
    b2 = vec_ref[7:8, 0:d]

    def layernorm(v, g, b):
        mean = jnp.mean(v, axis=-1, keepdims=True)
        # torch.std is unbiased (Bessel correction, N-1)
        var = jnp.sum((v - mean) ** 2, axis=-1, keepdims=True) * (1.0 / (d - 1))
        std = jnp.sqrt(var)
        # exact EUP reciprocal (off the VALU divide path, full accuracy)
        return g * (v - mean) * pl.reciprocal(std + eps, approx=False) + b

    # -------- sublayer 0: x + self_attn(LayerNorm(x)) --------
    xn = layernorm(x, ln1_g, ln1_b)

    # Fused QKV: one (rows, D) x (D, 3D) MXU contraction.  1/sqrt(d_k) was
    # folded into the Q columns / bq at pack time (zero runtime cost).
    qkv = jnp.dot(xn, wqkv_ref[...], preferred_element_type=jnp.float32) + bqkv
    q = qkv[:, 0:d]
    k = qkv[:, d:2 * d]
    v = qkv[:, 2 * d:3 * d]

    def split_heads(t):
        # (rows, D) -> (H*nb, S, DK), slab index = h*nb + b.  Built from lane
        # slices + tile-aligned leading reshapes + a leading-axis concat only
        # (no minor-dim reshape / 4-D transpose -> safe Mosaic lowering).
        parts = [t[:, h * d_k:(h + 1) * d_k].reshape(nb, s, d_k)
                 for h in range(n_heads)]
        return jnp.concatenate(parts, axis=0)

    qh = split_heads(q)                       # (H*nb, S, DK)
    kh = split_heads(k)
    vh = split_heads(v)

    # ONE batched contraction for all heads and batches; no materialized k.T.
    scores = jnp.einsum("bqd,bkd->bqk", qh, kh,
                        preferred_element_type=jnp.float32)     # (H*nb, S, S)
    # Additive padding-mask bias (0 / -1e9), precomputed head-major in wrapper:
    # one broadcast VPU add for the whole slab (== masked_fill after softmax,
    # since exp underflows to 0 for masked entries in f32).
    scores = scores + bias_ref[...]

    # Single softmax over the whole (H*nb, S, S) slab.
    m = jnp.max(scores, axis=-1, keepdims=True)
    e = jnp.exp(scores - m)
    p = e * pl.reciprocal(jnp.sum(e, axis=-1, keepdims=True), approx=True)

    ctx = jnp.einsum("bqk,bkd->bqd", p, vh,
                     preferred_element_type=jnp.float32)        # (H*nb, S, DK)

    # Reassemble (rows, D) head-major per position (matches torch's
    # transpose(0,2,1,3).reshape concat order): leading slices + one lane concat.
    heads = jnp.concatenate(
        [ctx[h * nb:(h + 1) * nb].reshape(rows, d_k) for h in range(n_heads)],
        axis=-1)                                                # (rows, D)

    # Single output projection for all heads and all fused batch rows.
    attn = jnp.dot(heads, wo_ref[...], preferred_element_type=jnp.float32) + bo
    x1 = x + attn                                # dropout == identity (eval)

    # -------- sublayer 1: x1 + FFN(LayerNorm(x1)) --------
    xn2 = layernorm(x1, ln2_g, ln2_b)
    hidden = jnp.maximum(
        jnp.dot(xn2, w1_ref[...], preferred_element_type=jnp.float32) + b1, 0.0)
    ff = jnp.dot(hidden, w2_ref[...], preferred_element_type=jnp.float32) + b2

    out_ref[...] = (x1 + ff).reshape(nb, s, d)   # dropout == identity (eval)


# ------------------------------- wrapper -------------------------------------
def _pack_params(params):
    (ln1_g, ln1_b, wq, bq, wk, bk, wv, bv, wo, bo,
     ln2_g, ln2_b, w1, b1, w2, b2) = params
    d = wq.shape[0]
    d_ff = w1.shape[1]
    d_k = d // H
    inv = jnp.float32(1.0 / math.sqrt(d_k))
    # Fold 1/sqrt(d_k) into the Q projection at pack time.
    wqkv = jnp.concatenate([wq * inv, wk, wv], axis=1)    # (D, 3D)
    bqkv = jnp.concatenate([bq * inv, bk, bv], axis=1)    # (1, 3D)
    vw = max(3 * d, d_ff)
    pad = lambda r: jnp.pad(r, ((0, 0), (0, vw - r.shape[1])))
    vecs = jnp.concatenate(
        [pad(ln1_g), pad(ln1_b), pad(bqkv), pad(bo),
         pad(ln2_g), pad(ln2_b), pad(b1), pad(b2)], axis=0)   # (8, vw)
    return vecs, wqkv, wo, w1, w2


def encoder_layer(x, mask, params):
    b, s, d = x.shape
    vecs, wqkv, wo, w1, w2 = _pack_params(params)
    d_ff = w1.shape[1]

    # Additive attention bias, tiled head-major to match the in-kernel
    # (H*B, S, S) slab ordering (index = h*B + batch).  Computed once in XLA.
    bias = jnp.where(mask == 0.0, jnp.float32(NEG_INF), jnp.float32(0.0))  # (B,1,S)
    bias = jnp.tile(bias, (H, 1, 1))                                       # (H*B,1,S)

    # Grid: single step with the whole batch fused.  At these dims the per-step
    # pipeline overhead (and per-core weight refetch on a dual-TC v7x split)
    # exceeds the per-core work, so no batch-parallel grid / device sniffing.
    # TODO(synk): gate a parallel split on rows-per-core (>=~128) when scaling up.
    kernel = functools.partial(
        _encoder_layer_kernel, nb=b, s=s, d=d,
        n_heads=H, d_k=d // H, d_ff=d_ff, eps=EPS)

    def full(shape):
        return pl.BlockSpec(shape, lambda i, _n=len(shape): (0,) * _n)

    in_specs = [
        full((b, s, d)),        # x
        full(bias.shape),       # additive mask bias (head-major)
        full(vecs.shape),       # packed LN/bias vectors
        full(wqkv.shape),       # fused (scaled-Q) Wqkv
        full(wo.shape),         # Wo
        full(w1.shape),         # W1
        full(w2.shape),         # W2
    ]

    return pl.pallas_call(
        kernel,
        out_shape=jax.ShapeDtypeStruct((b, s, d), jnp.float32),
        grid_spec=pltpu.PrefetchScalarGridSpec(
            num_scalar_prefetch=0,
            grid=(1,),
            in_specs=in_specs,
            out_specs=full((b, s, d)),
        ),
        compiler_params=pltpu.CompilerParams(dimension_semantics=("arbitrary",)),
    )(x, bias, vecs, wqkv, wo, w1, w2)


# --------------------------- pure-JAX reference ------------------------------
def encoder_layer_ref(x, mask, params):
    (ln1_g, ln1_b, wq, bq, wk, bk, wv, bv, wo, bo,
     ln2_g, ln2_b, w1, b1, w2, b2) = params

    def layernorm(v, g, b):
        mean = v.mean(-1, keepdims=True)
        var = ((v - mean) ** 2).sum(-1, keepdims=True) / (v.shape[-1] - 1)
        return g * (v - mean) / (jnp.sqrt(var) + EPS) + b

    xn = layernorm(x, ln1_g, ln1_b)
    q = xn @ wq + bq
    k = xn @ wk + bk
    v = xn @ wv + bv
    q = q.reshape(B, S, H, DK).transpose(0, 2, 1, 3)
    k = k.reshape(B, S, H, DK).transpose(0, 2, 1, 3)
    v = v.reshape(B, S, H, DK).transpose(0, 2, 1, 3)
    scores = jnp.einsum("bhqd,bhkd->bhqk", q, k) / math.sqrt(DK)
    scores = jnp.where(mask[:, None, :, :] == 0.0, NEG_INF, scores)
    p = jax.nn.softmax(scores, axis=-1)
    attn = jnp.einsum("bhqk,bhkd->bhqd", p, v).transpose(0, 2, 1, 3).reshape(B, S, D)
    x1 = x + (attn @ wo + bo)

    xn2 = layernorm(x1, ln2_g, ln2_b)
    ff = jnp.maximum(xn2 @ w1 + b1, 0.0) @ w2 + b2
    return x1 + ff


# --------------------------------- main --------------------------------------
if __name__ == "__main__":
    key = jax.random.PRNGKey(0)
    keys = jax.random.split(key, 12)

    def rnd(k, shape, scale=0.1):
        return (scale * jax.random.normal(k, shape)).astype(jnp.float32)

    # Parameters (weights stored as (in, out); PyTorch Linear is x @ W.T + b —
    # since we initialize synthetically, the (in, out) convention is equivalent).
    ln1_g = jnp.ones((1, D), jnp.float32)
    ln1_b = jnp.zeros((1, D), jnp.float32)
    wq, bq = rnd(keys[0], (D, D)), jnp.zeros((1, D), jnp.float32)
    wk, bk = rnd(keys[1], (D, D)), jnp.zeros((1, D), jnp.float32)
    wv, bv = rnd(keys[2], (D, D)), jnp.zeros((1, D), jnp.float32)
    wo, bo = rnd(keys[3], (D, D)), rnd(keys[4], (1, D), 0.02)
    ln2_g = jnp.ones((1, D), jnp.float32)
    ln2_b = jnp.zeros((1, D), jnp.float32)
    w1, b1 = rnd(keys[5], (D, DFF)), rnd(keys[6], (1, DFF), 0.02)
    w2, b2 = rnd(keys[7], (DFF, D)), rnd(keys[8], (1, D), 0.02)

    params = (ln1_g, ln1_b, wq, bq, wk, bk, wv, bv, wo, bo,
              ln2_g, ln2_b, w1, b1, w2, b2)

    x = rnd(keys[9], (B, S, D), 1.0)
    # mask out the last two positions of batch element 1
    mask = jnp.ones((B, 1, S), jnp.float32)
    mask = mask.at[1, 0, -2:].set(0.0)

    out = encoder_layer(x, mask, params)
    out = jax.block_until_ready(out)

    ref = encoder_layer_ref(x, mask, params)
    assert out.shape == (B, S, D)
    assert jnp.allclose(out, ref, atol=1e-3, rtol=1e-3), "mismatch vs reference"

    print("KERNEL_OK")
</pallas_src>

<mosaic_0001>
module attributes {stable_mosaic.version = 11 : i64} {
  func.func @_encoder_layer_kernel(%arg0: i32, %arg1: memref<2x8x32xf32, #tpu.memory_space<vmem>>, %arg2: memref<8x1x8xf32, #tpu.memory_space<vmem>>, %arg3: memref<8x96xf32, #tpu.memory_space<vmem>>, %arg4: memref<32x96xf32, #tpu.memory_space<vmem>>, %arg5: memref<32x32xf32, #tpu.memory_space<vmem>>, %arg6: memref<32x64xf32, #tpu.memory_space<vmem>>, %arg7: memref<64x32xf32, #tpu.memory_space<vmem>>, %arg8: memref<2x8x32xf32, #tpu.memory_space<vmem>>) attributes {dimension_semantics = [#tpu.dimension_semantics<arbitrary>], iteration_bounds = array<i64: 1>, scalar_prefetch = 0 : i64, scratch_operands = 0 : i64, tpu.core_type = #tpu.core_type<tc>, window_params = [{pipeline_mode = #tpu.pipeline_mode<synchronous>, transform_indices = @transform_0, window_bounds = array<i64: 2, 8, 32>}, {pipeline_mode = #tpu.pipeline_mode<synchronous>, transform_indices = @transform_1, window_bounds = array<i64: 8, 1, 8>}, {pipeline_mode = #tpu.pipeline_mode<synchronous>, transform_indices = @transform_2, window_bounds = array<i64: 8, 96>}, {pipeline_mode = #tpu.pipeline_mode<synchronous>, transform_indices = @transform_3, window_bounds = array<i64: 32, 96>}, {pipeline_mode = #tpu.pipeline_mode<synchronous>, transform_indices = @transform_4, window_bounds = array<i64: 32, 32>}, {pipeline_mode = #tpu.pipeline_mode<synchronous>, transform_indices = @transform_5, window_bounds = array<i64: 32, 64>}, {pipeline_mode = #tpu.pipeline_mode<synchronous>, transform_indices = @transform_6, window_bounds = array<i64: 64, 32>}, {pipeline_mode = #tpu.pipeline_mode<synchronous>, transform_indices = @transform_7, window_bounds = array<i64: 2, 8, 32>}]} {
    %c0 = arith.constant 0 : index
    %c0_0 = arith.constant 0 : index
    %c0_1 = arith.constant 0 : index
    %0 = vector.load %arg1[%c0, %c0_0, %c0_1] : memref<2x8x32xf32, #tpu.memory_space<vmem>>, vector<2x8x32xf32>
    %1 = vector.shape_cast %0 : vector<2x8x32xf32> to vector<16x32xf32>
    %c0_2 = arith.constant 0 : index
    %c0_3 = arith.constant 0 : index
    %2 = vector.load %arg3[%c0_2, %c0_3] : memref<8x96xf32, #tpu.memory_space<vmem>>, vector<1x32xf32>
    %c1 = arith.constant 1 : index
    %c0_4 = arith.constant 0 : index
    %3 = vector.load %arg3[%c1, %c0_4] : memref<8x96xf32, #tpu.memory_space<vmem>>, vector<1x32xf32>
    %c2 = arith.constant 2 : index
    %c0_5 = arith.constant 0 : index
    %4 = vector.load %arg3[%c2, %c0_5] : memref<8x96xf32, #tpu.memory_space<vmem>>, vector<1x96xf32>
    %c3 = arith.constant 3 : index
    %c0_6 = arith.constant 0 : index
    %5 = vector.load %arg3[%c3, %c0_6] : memref<8x96xf32, #tpu.memory_space<vmem>>, vector<1x32xf32>
    %c4 = arith.constant 4 : index
    %c0_7 = arith.constant 0 : index
    %6 = vector.load %arg3[%c4, %c0_7] : memref<8x96xf32, #tpu.memory_space<vmem>>, vector<1x32xf32>
    %c5 = arith.constant 5 : index
    %c0_8 = arith.constant 0 : index
    %7 = vector.load %arg3[%c5, %c0_8] : memref<8x96xf32, #tpu.memory_space<vmem>>, vector<1x32xf32>
    %c6 = arith.constant 6 : index
    %c0_9 = arith.constant 0 : index
    %8 = vector.load %arg3[%c6, %c0_9] : memref<8x96xf32, #tpu.memory_space<vmem>>, vector<1x64xf32>
    %c7 = arith.constant 7 : index
    %c0_10 = arith.constant 0 : index
    %9 = vector.load %arg3[%c7, %c0_10] : memref<8x96xf32, #tpu.memory_space<vmem>>, vector<1x32xf32>
    %cst = arith.constant dense<0.000000e+00> : vector<16xf32>
    %10 = vector.multi_reduction <add>, %1, %cst [1] : vector<16x32xf32> to vector<16xf32>
    %11 = vector.shape_cast %10 : vector<16xf32> to vector<16x1xf32>
    %cst_11 = arith.constant 3.200000e+01 : f32
    %12 = vector.broadcast %cst_11 : f32 to vector<16x1xf32>
    %13 = arith.divf %11, %12 : vector<16x1xf32>
    %14 = vector.broadcast %13 : vector<16x1xf32> to vector<16x32xf32>
    %15 = arith.subf %1, %14 : vector<16x32xf32>
    %16 = arith.mulf %15, %15 : vector<16x32xf32>
    %cst_12 = arith.constant dense<0.000000e+00> : vector<16xf32>
    %17 = vector.multi_reduction <add>, %16, %cst_12 [1] : vector<16x32xf32> to vector<16xf32>
    %18 = vector.shape_cast %17 : vector<16xf32> to vector<16x1xf32>
    %cst_13 = arith.constant 0.0322580636 : f32
    %19 = vector.broadcast %cst_13 : f32 to vector<16x1xf32>
    %20 = arith.mulf %18, %19 : vector<16x1xf32>
    %21 = math.sqrt %20 : vector<16x1xf32>
    %22 = vector.broadcast %13 : vector<16x1xf32> to vector<16x32xf32>
    %23 = arith.subf %1, %22 : vector<16x32xf32>
    %24 = vector.broadcast %2 : vector<1x32xf32> to vector<16x32xf32>
    %25 = arith.mulf %24, %23 : vector<16x32xf32>
    %cst_14 = arith.constant 9.99999997E-7 : f32
    %26 = vector.broadcast %cst_14 : f32 to vector<16x1xf32>
    %27 = arith.addf %21, %26 : vector<16x1xf32>
    %28 = tpu.reciprocal %27 : vector<16x1xf32> -> vector<16x1xf32>
    %29 = vector.broadcast %28 : vector<16x1xf32> to vector<16x32xf32>
    %30 = arith.mulf %25, %29 : vector<16x32xf32>
    %31 = vector.broadcast %3 : vector<1x32xf32> to vector<16x32xf32>
    %32 = arith.addf %30, %31 : vector<16x32xf32>
    %c0_15 = arith.constant 0 : index
    %c0_16 = arith.constant 0 : index
    %33 = vector.load %arg4[%c0_15, %c0_16] : memref<32x96xf32, #tpu.memory_space<vmem>>, vector<32x96xf32>
    %cst_17 = arith.constant dense<0.000000e+00> : vector<16x96xf32>
    %34 = tpu.matmul %32, %33, %cst_17 {dimension_numbers = #tpu.dot_dimension_numbers<[1], [0], [0], [1], [0, 0, 1, 1], [], []>} : vector<16x32xf32>, vector<32x96xf32>, vector<16x96xf32> -> vector<16x96xf32>
    %35 = vector.broadcast %4 : vector<1x96xf32> to vector<16x96xf32>
    %36 = arith.addf %34, %35 : vector<16x96xf32>
    %37 = vector.extract_strided_slice %36 {offsets = [0, 0], sizes = [16, 32], strides = [1, 1]} : vector<16x96xf32> to vector<16x32xf32>
    %38 = vector.extract_strided_slice %36 {offsets = [0, 32], sizes = [16, 32], strides = [1, 1]} : vector<16x96xf32> to vector<16x32xf32>
    %39 = vector.extract_strided_slice %36 {offsets = [0, 64], sizes = [16, 32], strides = [1, 1]} : vector<16x96xf32> to vector<16x32xf32>
    %40 = vector.extract_strided_slice %37 {offsets = [0, 0], sizes = [16, 8], strides = [1, 1]} : vector<16x32xf32> to vector<16x8xf32>
    %41 = vector.shape_cast %40 : vector<16x8xf32> to vector<2x8x8xf32>
    %42 = vector.extract_strided_slice %37 {offsets = [0, 8], sizes = [16, 8], strides = [1, 1]} : vector<16x32xf32> to vector<16x8xf32>
    %43 = vector.shape_cast %42 : vector<16x8xf32> to vector<2x8x8xf32>
    %44 = vector.extract_strided_slice %37 {offsets = [0, 16], sizes = [16, 8], strides = [1, 1]} : vector<16x32xf32> to vector<16x8xf32>
    %45 = vector.shape_cast %44 : vector<16x8xf32> to vector<2x8x8xf32>
    %46 = vector.extract_strided_slice %37 {offsets = [0, 24], sizes = [16, 8], strides = [1, 1]} : vector<16x32xf32> to vector<16x8xf32>
    %47 = vector.shape_cast %46 : vector<16x8xf32> to vector<2x8x8xf32>
    %48 = tpu.concatenate %41, %43, %45, %47 in 0 : vector<2x8x8xf32>, vector<2x8x8xf32>, vector<2x8x8xf32>, vector<2x8x8xf32> -> vector<8x8x8xf32>
    %49 = vector.extract_strided_slice %38 {offsets = [0, 0], sizes = [16, 8], strides = [1, 1]} : vector<16x32xf32> to vector<16x8xf32>
    %50 = vector.shape_cast %49 : vector<16x8xf32> to vector<2x8x8xf32>
    %51 = vector.extract_strided_slice %38 {offsets = [0, 8], sizes = [16, 8], strides = [1, 1]} : vector<16x32xf32> to vector<16x8xf32>
    %52 = vector.shape_cast %51 : vector<16x8xf32> to vector<2x8x8xf32>
    %53 = vector.extract_strided_slice %38 {offsets = [0, 16], sizes = [16, 8], strides = [1, 1]} : vector<16x32xf32> to vector<16x8xf32>
    %54 = vector.shape_cast %53 : vector<16x8xf32> to vector<2x8x8xf32>
    %55 = vector.extract_strided_slice %38 {offsets = [0, 24], sizes = [16, 8], strides = [1, 1]} : vector<16x32xf32> to vector<16x8xf32>
    %56 = vector.shape_cast %55 : vector<16x8xf32> to vector<2x8x8xf32>
    %57 = tpu.concatenate %50, %52, %54, %56 in 0 : vector<2x8x8xf32>, vector<2x8x8xf32>, vector<2x8x8xf32>, vector<2x8x8xf32> -> vector<8x8x8xf32>
    %58 = vector.extract_strided_slice %39 {offsets = [0, 0], sizes = [16, 8], strides = [1, 1]} : vector<16x32xf32> to vector<16x8xf32>
    %59 = vector.shape_cast %58 : vector<16x8xf32> to vector<2x8x8xf32>
    %60 = vector.extract_strided_slice %39 {offsets = [0, 8], sizes = [16, 8], strides = [1, 1]} : vector<16x32xf32> to vector<16x8xf32>
    %61 = vector.shape_cast %60 : vector<16x8xf32> to vector<2x8x8xf32>
    %62 = vector.extract_strided_slice %39 {offsets = [0, 16], sizes = [16, 8], strides = [1, 1]} : vector<16x32xf32> to vector<16x8xf32>
    %63 = vector.shape_cast %62 : vector<16x8xf32> to vector<2x8x8xf32>
    %64 = vector.extract_strided_slice %39 {offsets = [0, 24], sizes = [16, 8], strides = [1, 1]} : vector<16x32xf32> to vector<16x8xf32>
    %65 = vector.shape_cast %64 : vector<16x8xf32> to vector<2x8x8xf32>
    %66 = tpu.concatenate %59, %61, %63, %65 in 0 : vector<2x8x8xf32>, vector<2x8x8xf32>, vector<2x8x8xf32>, vector<2x8x8xf32> -> vector<8x8x8xf32>
    "tpu.trace_start"() <{level = 10 : i32, message = "bqd,bkd->bqk"}> : () -> ()
    %cst_18 = arith.constant dense<0.000000e+00> : vector<8x8x8xf32>
    %67 = tpu.matmul %48, %57, %cst_18 {dimension_numbers = #tpu.dot_dimension_numbers<[2], [2], [1], [1], [0, 0, 0, 1, 1, 1], [0], [0]>} : vector<8x8x8xf32>, vector<8x8x8xf32>, vector<8x8x8xf32> -> vector<8x8x8xf32>
    "tpu.trace_stop"() : () -> ()
    %c0_19 = arith.constant 0 : index
    %c0_20 = arith.constant 0 : index
    %c0_21 = arith.constant 0 : index
    %68 = vector.load %arg2[%c0_19, %c0_20, %c0_21] : memref<8x1x8xf32, #tpu.memory_space<vmem>>, vector<8x1x8xf32>
    %69 = vector.broadcast %68 : vector<8x1x8xf32> to vector<8x8x8xf32>
    %70 = arith.addf %67, %69 : vector<8x8x8xf32>
    %cst_22 = arith.constant dense<0xFF800000> : vector<8x8xf32>
    %71 = vector.multi_reduction <maximumf>, %70, %cst_22 [2] : vector<8x8x8xf32> to vector<8x8xf32>
    %72 = vector.shape_cast %71 : vector<8x8xf32> to vector<8x8x1xf32>
    %73 = vector.broadcast %72 : vector<8x8x1xf32> to vector<8x8x8xf32>
    %74 = arith.subf %70, %73 : vector<8x8x8xf32>
    %75 = math.exp %74 : vector<8x8x8xf32>
    %cst_23 = arith.constant dense<0.000000e+00> : vector<8x8xf32>
    %76 = vector.multi_reduction <add>, %75, %cst_23 [2] : vector<8x8x8xf32> to vector<8x8xf32>
    %77 = vector.shape_cast %76 : vector<8x8xf32> to vector<8x8x1xf32>
    %78 = tpu.reciprocal %77 {approx = true} : vector<8x8x1xf32> -> vector<8x8x1xf32>
    %79 = vector.broadcast %78 : vector<8x8x1xf32> to vector<8x8x8xf32>
    %80 = arith.mulf %75, %79 : vector<8x8x8xf32>
    "tpu.trace_start"() <{level = 10 : i32, message = "bqk,bkd->bqd"}> : () -> ()
    %cst_24 = arith.constant dense<0.000000e+00> : vector<8x8x8xf32>
    %81 = tpu.matmul %80, %66, %cst_24 {dimension_numbers = #tpu.dot_dimension_numbers<[2], [1], [1], [2], [0, 0, 0, 1, 1, 2], [0], [0]>} : vector<8x8x8xf32>, vector<8x8x8xf32>, vector<8x8x8xf32> -> vector<8x8x8xf32>
    "tpu.trace_stop"() : () -> ()
    %82 = vector.extract_strided_slice %81 {offsets = [0, 0, 0], sizes = [2, 8, 8], strides = [1, 1, 1]} : vector<8x8x8xf32> to vector<2x8x8xf32>
    %83 = vector.shape_cast %82 : vector<2x8x8xf32> to vector<16x8xf32>
    %84 = vector.extract_strided_slice %81 {offsets = [2, 0, 0], sizes = [2, 8, 8], strides = [1, 1, 1]} : vector<8x8x8xf32> to vector<2x8x8xf32>
    %85 = vector.shape_cast %84 : vector<2x8x8xf32> to vector<16x8xf32>
    %86 = vector.extract_strided_slice %81 {offsets = [4, 0, 0], sizes = [2, 8, 8], strides = [1, 1, 1]} : vector<8x8x8xf32> to vector<2x8x8xf32>
    %87 = vector.shape_cast %86 : vector<2x8x8xf32> to vector<16x8xf32>
    %88 = vector.extract_strided_slice %81 {offsets = [6, 0, 0], sizes = [2, 8, 8], strides = [1, 1, 1]} : vector<8x8x8xf32> to vector<2x8x8xf32>
    %89 = vector.shape_cast %88 : vector<2x8x8xf32> to vector<16x8xf32>
    %90 = tpu.concatenate %83, %85, %87, %89 in 1 : vector<16x8xf32>, vector<16x8xf32>, vector<16x8xf32>, vector<16x8xf32> -> vector<16x32xf32>
    %c0_25 = arith.constant 0 : index
    %c0_26 = arith.constant 0 : index
    %91 = vector.load %arg5[%c0_25, %c0_26] : memref<32x32xf32, #tpu.memory_space<vmem>>, vector<32x32xf32>
    %cst_27 = arith.constant dense<0.000000e+00> : vector<16x32xf32>
    %92 = tpu.matmul %90, %91, %cst_27 {dimension_numbers = #tpu.dot_dimension_numbers<[1], [0], [0], [1], [0, 0, 1, 1], [], []>} : vector<16x32xf32>, vector<32x32xf32>, vector<16x32xf32> -> vector<16x32xf32>
    %93 = vector.broadcast %5 : vector<1x32xf32> to vector<16x32xf32>
    %94 = arith.addf %92, %93 : vector<16x32xf32>
    %95 = arith.addf %1, %94 : vector<16x32xf32>
    %cst_28 = arith.constant dense<0.000000e+00> : vector<16xf32>
    %96 = vector.multi_reduction <add>, %95, %cst_28 [1] : vector<16x32xf32> to vector<16xf32>
    %97 = vector.shape_cast %96 : vector<16xf32> to vector<16x1xf32>
    %cst_29 = arith.constant 3.200000e+01 : f32
    %98 = vector.broadcast %cst_29 : f32 to vector<16x1xf32>
    %99 = arith.divf %97, %98 : vector<16x1xf32>
    %100 = vector.broadcast %99 : vector<16x1xf32> to vector<16x32xf32>
    %101 = arith.subf %95, %100 : vector<16x32xf32>
    %102 = arith.mulf %101, %101 : vector<16x32xf32>
    %cst_30 = arith.constant dense<0.000000e+00> : vector<16xf32>
    %103 = vector.multi_reduction <add>, %102, %cst_30 [1] : vector<16x32xf32> to vector<16xf32>
    %104 = vector.shape_cast %103 : vector<16xf32> to vector<16x1xf32>
    %cst_31 = arith.constant 0.0322580636 : f32
    %105 = vector.broadcast %cst_31 : f32 to vector<16x1xf32>
    %106 = arith.mulf %104, %105 : vector<16x1xf32>
    %107 = math.sqrt %106 : vector<16x1xf32>
    %108 = vector.broadcast %99 : vector<16x1xf32> to vector<16x32xf32>
    %109 = arith.subf %95, %108 : vector<16x32xf32>
    %110 = vector.broadcast %6 : vector<1x32xf32> to vector<16x32xf32>
    %111 = arith.mulf %110, %109 : vector<16x32xf32>
    %cst_32 = arith.constant 9.99999997E-7 : f32
    %112 = vector.broadcast %cst_32 : f32 to vector<16x1xf32>
    %113 = arith.addf %107, %112 : vector<16x1xf32>
    %114 = tpu.reciprocal %113 : vector<16x1xf32> -> vector<16x1xf32>
    %115 = vector.broadcast %114 : vector<16x1xf32> to vector<16x32xf32>
    %116 = arith.mulf %111, %115 : vector<16x32xf32>
    %117 = vector.broadcast %7 : vector<1x32xf32> to vector<16x32xf32>
    %118 = arith.addf %116, %117 : vector<16x32xf32>
    %c0_33 = arith.constant 0 : index
    %c0_34 = arith.constant 0 : index
    %119 = vector.load %arg6[%c0_33, %c0_34] : memref<32x64xf32, #tpu.memory_space<vmem>>, vector<32x64xf32>
    %cst_35 = arith.constant dense<0.000000e+00> : vector<16x64xf32>
    %120 = tpu.matmul %118, %119, %cst_35 {dimension_numbers = #tpu.dot_dimension_numbers<[1], [0], [0], [1], [0, 0, 1, 1], [], []>} : vector<16x32xf32>, vector<32x64xf32>, vector<16x64xf32> -> vector<16x64xf32>
    %121 = vector.broadcast %8 : vector<1x64xf32> to vector<16x64xf32>
    %122 = arith.addf %120, %121 : vector<16x64xf32>
    %cst_36 = arith.constant 0.000000e+00 : f32
    %123 = vector.broadcast %cst_36 : f32 to vector<16x64xf32>
    %124 = arith.maximumf %122, %123 : vector<16x64xf32>
    %c0_37 = arith.constant 0 : index
    %c0_38 = arith.constant 0 : index
    %125 = vector.load %arg7[%c0_37, %c0_38] : memref<64x32xf32, #tpu.memory_space<vmem>>, vector<64x32xf32>
    %cst_39 = arith.constant dense<0.000000e+00> : vector<16x32xf32>
    %126 = tpu.matmul %124, %125, %cst_39 {dimension_numbers = #tpu.dot_dimension_numbers<[1], [0], [0], [1], [0, 0, 1, 1], [], []>} : vector<16x64xf32>, vector<64x32xf32>, vector<16x32xf32> -> vector<16x32xf32>
    %127 = vector.broadcast %9 : vector<1x32xf32> to vector<16x32xf32>
    %128 = arith.addf %126, %127 : vector<16x32xf32>
    %129 = arith.addf %95, %128 : vector<16x32xf32>
    %130 = vector.shape_cast %129 : vector<16x32xf32> to vector<2x8x32xf32>
    %c0_40 = arith.constant 0 : index
    %c0_41 = arith.constant 0 : index
    %c0_42 = arith.constant 0 : index
    %131 = vector.load %arg8[%c0_40, %c0_41, %c0_42] : memref<2x8x32xf32, #tpu.memory_space<vmem>>, vector<2x8x32xf32>
    tpu.vector_store %arg8[%c0_40, %c0_41, %c0_42], %130 {strides = array<i32>} : memref<2x8x32xf32, #tpu.memory_space<vmem>>, vector<2x8x32xf32>,
    return
  }
  func.func @transform_0(%arg0: i32) -> (i32, i32, i32) {
    %c0_i32 = arith.constant 0 : i32
    %c0_i32_0 = arith.constant 0 : i32
    %c0_i32_1 = arith.constant 0 : i32
    %c0_i32_2 = arith.constant 0 : i32
    return %c0_i32, %c0_i32_0, %c0_i32_1 : i32, i32, i32
  }
  func.func @transform_1(%arg0: i32) -> (i32, i32, i32) {
    %c0_i32 = arith.constant 0 : i32
    %c0_i32_0 = arith.constant 0 : i32
    %c0_i32_1 = arith.constant 0 : i32
    %c0_i32_2 = arith.constant 0 : i32
    return %c0_i32, %c0_i32_0, %c0_i32_1 : i32, i32, i32
  }
  func.func @transform_2(%arg0: i32) -> (i32, i32) {
    %c0_i32 = arith.constant 0 : i32
    %c0_i32_0 = arith.constant 0 : i32
    %c0_i32_1 = arith.constant 0 : i32
    return %c0_i32, %c0_i32_0 : i32, i32
  }
  func.func @transform_3(%arg0: i32) -> (i32, i32) {
    %c0_i32 = arith.constant 0 : i32
    %c0_i32_0 = arith.constant 0 : i32
    %c0_i32_1 = arith.constant 0 : i32
    return %c0_i32, %c0_i32_0 : i32, i32
  }
  func.func @transform_4(%arg0: i32) -> (i32, i32) {
    %c0_i32 = arith.constant 0 : i32
    %c0_i32_0 = arith.constant 0 : i32
    %c0_i32_1 = arith.constant 0 : i32
    return %c0_i32, %c0_i32_0 : i32, i32
  }
  func.func @transform_5(%arg0: i32) -> (i32, i32) {
    %c0_i32 = arith.constant 0 : i32
    %c0_i32_0 = arith.constant 0 : i32
    %c0_i32_1 = arith.constant 0 : i32
    return %c0_i32, %c0_i32_0 : i32, i32
  }
  func.func @transform_6(%arg0: i32) -> (i32, i32) {
    %c0_i32 = arith.constant 0 : i32
    %c0_i32_0 = arith.constant 0 : i32
    %c0_i32_1 = arith.constant 0 : i32
    return %c0_i32, %c0_i32_0 : i32, i32
  }
  func.func @transform_7(%arg0: i32) -> (i32, i32, i32) {
    %c0_i32 = arith.constant 0 : i32
    %c0_i32_0 = arith.constant 0 : i32
    %c0_i32_1 = arith.constant 0 : i32
    %c0_i32_2 = arith.constant 0 : i32
    return %c0_i32, %c0_i32_0, %c0_i32_1 : i32, i32, i32
  }
}

</mosaic_0001>

<bundles_post_ra>
// kernel: tpu_custom_call.1
= control target key start
LH: loop header
LB: loop body
LE: loop exit
PB: predicated region body
PF: predicated region fallthrough
CT: control target
= control target key end

     0   :  { %12 = vsyncpa [#allocation3], 0  ;;  %s2702_s0 = inlined_call_operand.hbm [shape: f32[2,8,32], index: 0, kind: input, shape index: {}]   ;;  %s2703_s1 = inlined_call_operand.hbm [shape: f32[8,1,8], index: 1, kind: input, shape index: {}]   ;;  %s2704_s2 = inlined_call_operand.hbm [shape: f32[8,96], index: 2, kind: input, shape index: {}]   ;;  %s2705_s3 = inlined_call_operand.vmem [shape: f32[32,96], index: 3, kind: input, shape index: {}]   ;;  %s2706_s4 = inlined_call_operand.vmem [shape: f32[32,32], index: 4, kind: input, shape index: {}]   ;;  %s2707_s5 = inlined_call_operand.vmem [shape: f32[32,64], index: 5, kind: input, shape index: {}]   ;;  %s2708_s6 = inlined_call_operand.vmem [shape: f32[64,32], index: 6, kind: input, shape index: {}]   ;;  %s2709_s7 = inlined_call_operand.hbm [shape: f32[2,8,32], index: 7, kind: output, shape index: {}]  }
   0x1   :  { %13 = vsyncpa [#allocation6], 0 }
   0x2   :  { %14 = vsyncpa [#allocation4], 0  ;;  %s2366_s24 = smov [#allocation5]  }
   0x3   :  { %s32_s25 = sshll.u32 %s2366_s24, 4  ;;  %s33_s25 = int_to_ptr.vmem [resolvable:$true] %s32_s25 }
   0x4   :  { %s2288_s26 = scalar_lea.vmem %s33_s25, 128  ;;  %p2293_p1 = scmp.lt.s32.totalorder %s33_s25, %s33_s25 }
   0x5   :  { %p2289_p0 = scmp.ne.s32.totalorder %s33_s25, %s2288_s26  ;;  %p2294_p2 = scmp.lt.s32.totalorder %s2288_s26, %s2288_s26 }
   0x7   :  { %p2295_p3 = por %p2294_p2, %p2293_p1 }
   0x9   :  { %p2296_p4 = pnand %p2295_p3, %p2289_p0 }
   0xb   :  { %2299 = shalt.err (!%p2296_p4)
}
   0xc   :  { %s2367_s27 = smov 16   ;;  %s2368_s28 = smov 1  }
   0xd   :  { %38 = dma.hbm_to_vmem [thread:$0]  %s2703_s1, 128, %s33_s25, [#allocation6], %s2367_s27, %s2367_s27, %s2368_s28  }
   0xe   :  { %s2369_s8 = smov [#allocation2]  }
   0xf   :  { %s20_s9 = sshll.u32 %s2369_s8, 4  ;;  %s21_s9 = int_to_ptr.vmem [resolvable:$true] %s20_s9 }
  0x10   :  { %s2308_s10 = scalar_lea.vmem %s21_s9, 256  ;;  %p2313_p6 = scmp.lt.s32.totalorder %s21_s9, %s21_s9 }
  0x11   :  { %p2309_p5 = scmp.ne.s32.totalorder %s21_s9, %s2308_s10  ;;  %p2314_p7 = scmp.lt.s32.totalorder %s2308_s10, %s2308_s10 }
  0x13   :  { %p2315_p8 = por %p2314_p7, %p2313_p6 }
  0x15   :  { %p2316_p9 = pnand %p2315_p8, %p2309_p5 }
  0x17   :  { %2319 = shalt.err (!%p2316_p9)
}
  0x18   :  { %s2370_s11 = smov 128   ;;  %s2371_s12 = smov 8  }
  0x19   :  { %26 = dma.hbm_to_vmem [thread:$0]  %s2702_s0, 256, %s21_s9, [#allocation3], %s2370_s11, %s2370_s11, %s2371_s12  }
  0x1a   :  { %s2372_s1 = smov [#allocation7]  }
  0x1b   :  { %s45_s15 = sshll.u32 %s2372_s1, 4  ;;  %s46_s15 = int_to_ptr.vmem [resolvable:$true] %s45_s15 }
  0x1c   :  { %s2328_s16 = scalar_lea.vmem %s46_s15, 128  ;;  %p2333_p11 = scmp.lt.s32.totalorder %s46_s15, %s46_s15 }
  0x1d   :  { %p2329_p10 = scmp.ne.s32.totalorder %s46_s15, %s2328_s16  ;;  %p2334_p12 = scmp.lt.s32.totalorder %s2328_s16, %s2328_s16 }
  0x1f   :  { %p2335_p13 = por %p2334_p12, %p2333_p11 }
  0x21   :  { %p2336_p0 = pnand %p2335_p13, %p2329_p10 }
  0x23   :  { %2339 = shalt.err (!%p2336_p0)
}
  0x24   :  { %48 = dma.hbm_to_vmem [thread:$0]  %s2704_s2, 128, %s46_s15, [#allocation6]  }
  0x25   :  { %2360 = dma.done.wait [#allocation3], 256  }
  0x26   :  { %2361 = vsyncadd [#allocation3], 4294967040 }
  0x27   :  { %2362 = dma.done.wait [#allocation6], 256  }
  0x28   :  { %2363 = vsyncadd [#allocation6], 4294967040  ;;  %vm76_vm0 = vcmask 261120   ;;  %v2436_v0 = vld [vmem:[#allocation2] sm:$0xff]  ;;  %v2438_v1 = vld [vmem:[#allocation2 + $0x8] sm:$0xff]  ;;  %v2373_v45 = vmov 0.0  }
  0x29   :  { %v77_v2 = vsel %vm76_vm0, %v2436_v0, 0.0  ;;  %v80_v3 = vsel %vm76_vm0, %v2438_v1, 0.0  ;;  %v133_v14 = vld [vmem:[%s2705_s3 + $0x18] sm:$0xff]  ;;  %v132_v15 = vld [vmem:[%s2705_s3 + $0x10] sm:$0xff]  ;;  %v131_v16 = vld [vmem:[%s2705_s3 + $0x8] sm:$0xff]  ;;  %2105 = vmatprep.subr.mxu0 %v2373_v45  ;;  %vm2374_vm5 = vmmov 0  }
  0x2a   :  { %78 = vadd.xlane.f32.xlu0 %v77_v2  ;;  %2084 = vmatprep.subr.mxu1 %v133_v14  ;;  %v130_v17 = vld [vmem:[%s2705_s3] sm:$0xff]  ;;  %v1976_v34 = vld [vmem:[#allocation7] ss:$0 sm:$0xff]  ;;  %v1977_v37 = vld [vmem:[#allocation7 + $0x1] ss:$0 sm:$0xff]  ;;  %s2375_s3 = smov 120  }
  0x2b   :  { %2085 = vmatpush3.msra.mxu1 %v133_v14  ;;  %v1978_v44 = vld [vmem:[#allocation7 + $0x2] ss:$0 sm:$0xff]  ;;  %2107 = vmatprep.mubr.msk.f32.mxu0 %vm2374_vm5, %v2373_v45  ;;  %s2376_s25 = smov 112   ;;  %s2377_s26 = smov 104   ;;  %vm291_vm6 = vcmask 64512   ;;  %vm1620_vm7 = vcmask 130048  }
  0x2c   :  { %2086 = vmatprep.subr.mxu1 %v132_v15  ;;  %s2378_s28 = smov 96   ;;  %v1981_v2 = vld [vmem:[#allocation5] ss:$0 sm:$0xff]  ;;  %v1983_v14 = vld [vmem:[#allocation5 + $0x2] ss:$0 sm:$0xff]  ;;  %s2379_s29 = smov 64  }
  0x2d   :  { %2087 = vmatpush3.msra.mxu1 %v132_v15  ;;  %s2380_s16 = smov 24   ;;  %vm1623_vm8 = vcmask 195584   ;;  %vm1872_vm13 = vcmask 523264   ;;  %s2381_s1 = smov [#allocation8]  }
  0x2e   :  { %81 = vadd.xlane.f32.xlu0 %v80_v3  ;;  %2088 = vmatprep.subr.mxu1 %v131_v16  ;;  %s1963_s15 = sshll.u32 %s2381_s1, 4  ;;  %s1964_s15 = int_to_ptr.vmem [resolvable:$true] %s1963_s15 }
  0x2f   :  { %2089 = vmatpush3.msra.mxu1 %v131_v16  ;;  %p2345_p2 = scmp.lt.s32.totalorder %s1964_s15, %s1964_s15 }
  0x30   :  { %2090 = vmatprep.subr.mxu1 %v130_v17 }
  0x31   :  { %2091 = vmatpush3.msra.mxu1 %v130_v17 }
  0x32   :  { %2095 = vmatprep.subr.mxu1 %v2373_v45 }
  0xb3   :  { %v79_v4 = vpop.xlane.xlu0 %78 }
  0xb4   :  { %v84_v5 = vmul.f32 0.03125, %v79_v4 }
  0xb6   :  { %v86_v6 = vsub.f32 %v2436_v0, %v84_v5 }
  0xb7   :  { %v82_v7 = vpop.xlane.xlu0 %81 }
  0xb8   :  { %v85_v8 = vmul.f32 0.03125, %v82_v7  ;;  %v88_v9 = vmul.f32 %v86_v6, %v86_v6  ;;  %v116_v35 = vmul.f32 %v1976_v34, %v86_v6  ;;  %v1982_v7 = vld [vmem:[#allocation5 + $0x1] ss:$0 sm:$0xff] }
  0xba   :  { %v87_v10 = vsub.f32 %v2438_v1, %v85_v8  ;;  %v90_v11 = vsel %vm76_vm0, %v88_v9, 0.0 }
  0xbb   :  { %91 = vadd.xlane.f32.xlu1 %v90_v11 }
  0xbc   :  { %v89_v12 = vmul.f32 %v87_v10, %v87_v10  ;;  %v117_v39 = vmul.f32 %v1976_v34, %v87_v10 }
  0xbe   :  { %v93_v13 = vsel %vm76_vm0, %v89_v12, 0.0  ;;  %v1984_v12 = vld [vmem:[#allocation5 + $0x3] ss:$0 sm:$0xff] }
  0xbf   :  { %94 = vadd.xlane.f32.xlu1 %v93_v13 }
 0x144   :  { %v92_v18 = vpop.xlane.xlu1 %91 }
 0x145   :  { %v96_v19 = vmul.f32 0.032258064, %v92_v18 }
 0x147   :  { %2232 = vrsqrt.f32 %v96_v19  ;;  %vm100_vm1 = vcmp.eq.f32.partialorder %v96_v19, inf  ;;  %v103_v24 = vand.u32 2147483648, %v96_v19  ;;  %vm102_vm2 = vcmp.eq.f32.partialorder %v96_v19, 0.0 }
 0x148   :  { %v95_v20 = vpop.xlane.xlu1 %94 }
 0x149   :  { %v97_v21 = vmul.f32 0.032258064, %v95_v20 }
 0x14b   :  { %2234 = vrsqrt.f32 %v97_v21  ;;  %vm107_vm3 = vcmp.eq.f32.partialorder %v97_v21, inf  ;;  %v110_v30 = vand.u32 2147483648, %v97_v21  ;;  %vm109_vm4 = vcmp.eq.f32.partialorder %v97_v21, 0.0 }
 0x154   :  { %v2233_v22 = vpop.eup %2232 }
 0x155   :  { %v99_v23 = vmul.f32 %v2233_v22, %v96_v19 }
 0x157   :  { %v101_v25 = vsel %vm100_vm1, %v96_v19, %v99_v23  ;;  %v1986_v23 = vld [vmem:[#allocation5 + $0x5] ss:$0 sm:$0xff] }
 0x158   :  { %v2235_v26 = vpop.eup %2234  ;;  %v104_v27 = vsel %vm102_vm2, %v103_v24, %v101_v25 }
 0x159   :  { %v106_v28 = vmul.f32 %v2235_v26, %v97_v21  ;;  %v118_v29 = vadd.f32 1e-06, %v104_v27 }
 0x15b   :  { %v108_v31 = vsel %vm107_vm3, %v97_v21, %v106_v28  ;;  %2236 = vrcp.f32 %v118_v29  ;;  %v1985_v21 = vld [vmem:[#allocation5 + $0x4] ss:$0 sm:$0xff]  ;;  %v1987_v28 = vld [vmem:[#allocation5 + $0x6] ss:$0 sm:$0xff] }
 0x15c   :  { %v111_v32 = vsel %vm109_vm4, %v110_v30, %v108_v31 }
 0x15d   :  { %v119_v33 = vadd.f32 1e-06, %v111_v32  ;;  %v1988_v32 = vld [vmem:[#allocation5 + $0x7] ss:$0 sm:$0xff] }
 0x15f   :  { %2238 = vrcp.f32 %v119_v33 }
 0x168   :  { %v2237_v36 = vpop.eup %2236 }
 0x169   :  { %v122_v38 = vmul.f32 %v2237_v36, %v116_v35 }
 0x16b   :  { %v128_v40 = vadd.f32 %v1977_v37, %v122_v38 }
 0x16c   :  { %v2239_v41 = vpop.eup %2238 }
 0x16d   :  { %v123_v42 = vmul.f32 %v2239_v41, %v117_v39  ;;  %2092 = vmatprep.mubr.msk.f32.mxu1 %vm76_vm0, %v128_v40 }
 0x16f   :  { %v129_v43 = vadd.f32 %v1977_v37, %v123_v42 }
 0x171   :  { %2093 = vmatmul.mubr.msk.f32.vlgmr.msra.gmra.mxu1 %vm76_vm0, %v129_v43 }
 0x172   :  { %2097 = vmatprep.mubr.msk.f32.mxu1 %vm2374_vm5, %v2373_v45 }
 0x231   :  { %v2094_v46 = vpop.f32.mrf.mxu1 }
 0x232   :  { %v2464_v47 = vadd.f32 %v2094_v46, %v1978_v44 }
 0x233   :  { %v210_v48 = vpop.f32.mrf.mxu1 }
 0x234   :  { %v2470_v49 = vadd.f32 %v1978_v44, %v210_v48  ;;  %223 = vrot.lane.b32.xlu1 %v2464_v47, %s2375_s3 }
 0x236   :  { %221 = vrot.lane.b32.xlu0 %v2470_v49, %s2375_s3 }
 0x238   :  { %225 = vrot.lane.b32.xlu1 %v2470_v49, %s2376_s25 }
 0x23a   :  { %229 = vrot.lane.b32.xlu0 %v2470_v49, %s2377_s26 }
 0x23c   :  { %227 = vrot.lane.b32.xlu1 %v2464_v47, %s2376_s25 }
 0x23e   :  { %289 = vrot.lane.b32.xlu0 %v2470_v49, %s2378_s28 }
 0x240   :  { %231 = vrot.lane.b32.xlu1 %v2464_v47, %s2377_s26 }
 0x244   :  { %366 = vrot.lane.b32.xlu1 %v2464_v47, %s2378_s28 }
 0x2a6   :  { %v2480_v50 = vpop.permute.xlu1 %223 }
 0x2a7   :  { %518 = vrot.lane.b32.xlu1 %v2480_v50, %s2378_s28 }
 0x2a8   :  { %v2483_v51 = vpop.permute.xlu0 %221 }
 0x2a9   :  { %442 = vrot.lane.b32.xlu0 %v2483_v51, %s2378_s28 }
 0x2aa   :  { %v2486_v52 = vpop.permute.xlu1 %225 }
 0x2ac   :  { %v2488_v53 = vpop.permute.xlu0 %229 }
 0x2ad   :  { %594 = vrot.lane.b32.xlu0 %v2486_v52, %s2378_s28 }
 0x2ae   :  { %v2491_v54 = vpop.permute.xlu1 %227 }
 0x2af   :  { %670 = vrot.lane.b32.xlu1 %v2491_v54, %s2378_s28 }
 0x2b0   :  { %v290_v55 = vpop.permute.xlu0 %289 }
 0x2b1   :  { %746 = vrot.lane.b32.xlu0 %v2488_v53, %s2378_s28  ;;  %2096 = vmatpush3.xpose.msk.msra.mxu1 %vm291_vm6, %v290_v55 }
 0x2b2   :  { %v2496_v56 = vpop.permute.xlu1 %231  ;;  %2100 = vmatprep.subr.mxu1 %v2373_v45 }
 0x2b3   :  { %822 = vrot.lane.b32.xlu1 %v2496_v56, %s2378_s28 }
 0x2b4   :  { %2098 = vmatmul.mubr.msk.f32.vlgmr.msra.gmra.mxu1 %vm291_vm6, %v2470_v49 }
 0x2b5   :  { %2102 = vmatprep.mubr.msk.f32.mxu1 %vm2374_vm5, %v2373_v45 }
 0x2b6   :  { %v367_v57 = vpop.permute.xlu1 %366 }
 0x2b7   :  { %2101 = vmatpush3.xpose.msk.msra.mxu1 %vm291_vm6, %v367_v57 }
 0x2b8   :  { %2110 = vmatprep.subr.mxu1 %v2373_v45 }
 0x2ba   :  { %2103 = vmatmul.mubr.msk.f32.vlgmr.msra.gmra.mxu1 %vm291_vm6, %v2464_v47 }
 0x2bb   :  { %2112 = vmatprep.mubr.msk.f32.mxu1 %vm2374_vm5, %v2373_v45 }
 0x319   :  { %v519_v58 = vpop.permute.xlu1 %518 }
 0x31a   :  { %2111 = vmatpush3.xpose.msk.msra.mxu1 %vm291_vm6, %v519_v58 }
 0x31b   :  { %v443_v59 = vpop.permute.xlu0 %442  ;;  %2120 = vmatprep.subr.mxu1 %v2373_v45 }
 0x31c   :  { %2106 = vmatpush3.xpose.msk.msra.mxu0 %vm291_vm6, %v443_v59 }
 0x31d   :  { %2113 = vmatmul.mubr.msk.f32.vlgmr.msra.gmra.mxu1 %vm291_vm6, %v2480_v50  ;;  %2115 = vmatprep.subr.mxu0 %v2373_v45 }
 0x31e   :  { %2122 = vmatprep.mubr.msk.f32.mxu1 %vm2374_vm5, %v2373_v45 }
 0x31f   :  { %2108 = vmatmul.mubr.msk.f32.vlgmr.msra.gmra.mxu0 %vm291_vm6, %v2483_v51  ;;  %v595_v60 = vpop.permute.xlu0 %594 }
 0x320   :  { %2116 = vmatpush3.xpose.msk.msra.mxu0 %vm291_vm6, %v595_v60  ;;  %2117 = vmatprep.mubr.msk.f32.mxu0 %vm2374_vm5, %v2373_v45 }
 0x321   :  { %v671_v61 = vpop.permute.xlu1 %670  ;;  %2125 = vmatprep.subr.mxu0 %v2373_v45 }
 0x322   :  { %2121 = vmatpush3.xpose.msk.msra.mxu1 %vm291_vm6, %v671_v61 }
 0x323   :  { %2118 = vmatmul.mubr.msk.f32.vlgmr.msra.gmra.mxu0 %vm291_vm6, %v2486_v52  ;;  %v747_v62 = vpop.permute.xlu0 %746  ;;  %2130 = vmatprep.subr.mxu1 %v2373_v45 }
 0x324   :  { %2126 = vmatpush3.xpose.msk.msra.mxu0 %vm291_vm6, %v747_v62  ;;  %2127 = vmatprep.mubr.msk.f32.mxu0 %vm2374_vm5, %v2373_v45 }
 0x325   :  { %v823_v63 = vpop.permute.xlu1 %822  ;;  %2123 = vmatmul.mubr.msk.f32.vlgmr.msra.gmra.mxu1 %vm291_vm6, %v2491_v54  ;;  %2135 = vmatprep.subr.mxu0 %v2373_v45 }
 0x326   :  { %2131 = vmatpush3.xpose.msk.msra.mxu1 %vm291_vm6, %v823_v63  ;;  %2132 = vmatprep.mubr.msk.f32.mxu1 %vm2374_vm5, %v2373_v45 }
 0x327   :  { %2128 = vmatmul.mubr.msk.f32.vlgmr.msra.gmra.mxu0 %vm291_vm6, %v2488_v53  ;;  %2140 = vmatprep.subr.mxu1 %v2373_v45 }
 0x328   :  { %2137 = vmatprep.mubr.msk.f32.mxu0 %vm2374_vm5, %v2373_v45 }
 0x329   :  { %2133 = vmatmul.mubr.msk.f32.vlgmr.msra.gmra.mxu1 %vm291_vm6, %v2496_v56 }
 0x32a   :  { %2142 = vmatprep.mubr.msk.f32.mxu1 %vm2374_vm5, %v2373_v45 }
 0x374   :  { %v362_v3 = vpop.f32.mrf.mxu1 }
 0x375   :  { %v363_v4 = vadd.f32 %v1981_v2, %v362_v3 }
 0x376   :  { %v2099_v5 = vpop.f32.mrf.mxu1 }
 0x377   :  { %v898_v6 = vsel %vm291_vm6, %v363_v4, -inf }
 0x378   :  { %899 = vmax.xlane.f32.xlu0 %v898_v6 }
 0x37a   :  { %v438_v8 = vpop.f32.mrf.mxu1 }
 0x37b   :  { %v439_v9 = vadd.f32 %v1982_v7, %v438_v8 }
 0x37c   :  { %v2104_v10 = vpop.f32.mrf.mxu1 }
 0x37d   :  { %v901_v11 = vsel %vm291_vm6, %v439_v9, -inf }
 0x37e   :  { %902 = vmax.xlane.f32.xlu1 %v901_v11 }
 0x3dd   :  { %v590_v13 = vpop.f32.mrf.mxu1 }
 0x3de   :  { %v591_v15 = vadd.f32 %v1984_v12, %v590_v13 }
 0x3df   :  { %v514_v16 = vpop.f32.mrf.mxu0  ;;  %v2114_v17 = vpop.f32.mrf.mxu1 }
 0x3e0   :  { %v515_v18 = vadd.f32 %v1983_v14, %v514_v16  ;;  %v907_v19 = vsel %vm291_vm6, %v591_v15, -inf }
 0x3e1   :  { %908 = vmax.xlane.f32.xlu0 %v907_v19  ;;  %v2109_v20 = vpop.f32.mrf.mxu0 }
 0x3e2   :  { %v904_v25 = vsel %vm291_vm6, %v515_v18, -inf }
 0x3e3   :  { %v666_v22 = vpop.f32.mrf.mxu0 }
 0x3e4   :  { %v667_v24 = vadd.f32 %v1985_v21, %v666_v22 }
 0x3e5   :  { %v742_v26 = vpop.f32.mrf.mxu1  ;;  %905 = vmax.xlane.f32.xlu0 %v904_v25  ;;  %v2119_v27 = vpop.f32.mrf.mxu0 }
 0x3e6   :  { %v743_v29 = vadd.f32 %v1986_v23, %v742_v26  ;;  %v910_v35 = vsel %vm291_vm6, %v667_v24, -inf }
 0x3e7   :  { %v2124_v30 = vpop.f32.mrf.mxu1  ;;  %v818_v31 = vpop.f32.mrf.mxu0 }
 0x3e8   :  { %v819_v33 = vadd.f32 %v1987_v28, %v818_v31  ;;  %v913_v34 = vsel %vm291_vm6, %v743_v29, -inf }
 0x3e9   :  { %914 = vmax.xlane.f32.xlu1 %v913_v34  ;;  %v894_v36 = vpop.f32.mrf.mxu1  ;;  %911 = vmax.xlane.f32.xlu0 %v910_v35  ;;  %v2129_v37 = vpop.f32.mrf.mxu0 }
 0x3ea   :  { %v895_v38 = vadd.f32 %v1988_v32, %v894_v36  ;;  %v916_v41 = vsel %vm291_vm6, %v819_v33, -inf }
 0x3eb   :  { %v2134_v39 = vpop.f32.mrf.mxu1 }
 0x3ec   :  { %v919_v40 = vsel %vm291_vm6, %v895_v38, -inf }
 0x3ed   :  { %920 = vmax.xlane.f32.xlu1 %v919_v40  ;;  %917 = vmax.xlane.f32.xlu0 %v916_v41 }
 0x3fe   :  { %1062 = vrot.lane.b32.xlu1 %v2464_v47, %s2379_s29 }
 0x401   :  { %v900_v42 = vpop.xlane.xlu0 %899 }
 0x402   :  { %1138 = vrot.lane.b32.xlu1 %v2483_v51, %s2379_s29  ;;  %v922_v43 = vsub.f32 %v363_v4, %v900_v42 }
 0x403   :  { %986 = vrot.lane.b32.xlu0 %v2470_v49, %s2379_s29 }
 0x404   :  { %v930_v44 = vmul.f32 1.442695, %v922_v43 }
 0x406   :  { %1214 = vrot.lane.b32.xlu1 %v2480_v50, %s2379_s29  ;;  %2240 = vpow2.f32 %v930_v44 }
 0x407   :  { %1290 = vrot.lane.b32.xlu0 %v2486_v52, %s2379_s29  ;;  %v903_v46 = vpop.xlane.xlu1 %902 }
 0x408   :  { %v923_v47 = vsub.f32 %v439_v9, %v903_v46 }
 0x40a   :  { %1366 = vrot.lane.b32.xlu1 %v2491_v54, %s2379_s29  ;;  %v932_v48 = vmul.f32 1.442695, %v923_v47 }
 0x40c   :  { %2242 = vpow2.f32 %v932_v48 }
 0x413   :  { %v2566_v51 = vpop.eup %2240 }
 0x414   :  { %v946_v49 = vsel %vm291_vm6, %v2566_v51, 0.0 }
 0x419   :  { %v2570_v50 = vpop.eup %2242 }
 0x41a   :  { %v949_v52 = vsel %vm291_vm6, %v2570_v50, 0.0 }
 0x426   :  { %947 = vadd.xlane.f32.xlu0 %v946_v49 }
 0x42e   :  { %950 = vadd.xlane.f32.xlu1 %v949_v52 }
 0x46a   :  { %v909_v54 = vpop.xlane.xlu0 %908 }
 0x46b   :  { %v925_v55 = vsub.f32 %v591_v15, %v909_v54 }
 0x46d   :  { %v936_v57 = vmul.f32 1.442695, %v925_v55 }
 0x46e   :  { %v906_v58 = vpop.xlane.xlu0 %905 }
 0x46f   :  { %2244 = vpow2.f32 %v936_v57  ;;  %v924_v59 = vsub.f32 %v515_v18, %v906_v58 }
 0x471   :  { %v934_v60 = vmul.f32 1.442695, %v924_v59 }
 0x472   :  { %v915_v61 = vpop.xlane.xlu1 %914  ;;  %v912_v62 = vpop.xlane.xlu0 %911 }
 0x473   :  { %2246 = vpow2.f32 %v934_v60  ;;  %v927_v63 = vsub.f32 %v743_v29, %v915_v61  ;;  %v926_v2 = vsub.f32 %v667_v24, %v912_v62  ;;  %v1629_v60 = vld [vmem:[%s2706_s4 + $0x18] sm:$0xff]  ;;  %v1627_v61 = vld [vmem:[%s2706_s4 + $0x8] sm:$0xff] }
 0x475   :  { %v940_v3 = vmul.f32 1.442695, %v927_v63  ;;  %v938_v4 = vmul.f32 1.442695, %v926_v2  ;;  %v1626_v63 = vld [vmem:[%s2706_s4] sm:$0xff] }
 0x476   :  { %v921_v5 = vpop.xlane.xlu1 %920  ;;  %v918_v6 = vpop.xlane.xlu0 %917 }
 0x477   :  { %2248 = vpow2.f32 %v940_v3  ;;  %v929_v7 = vsub.f32 %v895_v38, %v921_v5  ;;  %v928_v8 = vsub.f32 %v819_v33, %v918_v6 }
 0x478   :  { %2250 = vpow2.f32 %v938_v4 }
 0x479   :  { %v944_v9 = vmul.f32 1.442695, %v929_v7  ;;  %v942_v10 = vmul.f32 1.442695, %v928_v8 }
 0x47a   :  { %v1063_v11 = vpop.permute.xlu1 %1062  ;;  %v987_v12 = vpop.permute.xlu0 %986 }
 0x47b   :  { %2252 = vpow2.f32 %v944_v9  ;;  %2136 = vmatpush3.msra.mxu0 %v987_v12  ;;  %2141 = vmatpush3.msra.mxu1 %v1063_v11 }
 0x47c   :  { %v2245_v13 = vpop.eup %2244  ;;  %2254 = vpow2.f32 %v942_v10  ;;  %2145 = vmatprep.subr.mxu0 %v2373_v45  ;;  %2150 = vmatprep.subr.mxu1 %v2373_v45 }
 0x47d   :  { %v955_v14 = vsel %vm291_vm6, %v2245_v13, 0.0 }
 0x47e   :  { %956 = vadd.xlane.f32.xlu1 %v955_v14  ;;  %v1139_v25 = vpop.permute.xlu1 %1138  ;;  %v1291_v26 = vpop.permute.xlu0 %1290 }
 0x480   :  { %v2247_v15 = vpop.eup %2246 }
 0x481   :  { %v952_v16 = vsel %vm291_vm6, %v2247_v15, 0.0 }
 0x482   :  { %953 = vadd.xlane.f32.xlu0 %v952_v16  ;;  %v1215_v27 = vpop.permute.xlu1 %1214 }
 0x484   :  { %v2249_v17 = vpop.eup %2248 }
 0x485   :  { %v2251_v18 = vpop.eup %2250  ;;  %v961_v19 = vsel %vm291_vm6, %v2249_v17, 0.0 }
 0x486   :  { %962 = vadd.xlane.f32.xlu1 %v961_v19  ;;  %v958_v20 = vsel %vm291_vm6, %v2251_v18, 0.0  ;;  %v1367_v29 = vpop.permute.xlu1 %1366 }
 0x487   :  { %959 = vadd.xlane.f32.xlu0 %v958_v20 }
 0x488   :  { %v2580_v21 = vpop.eup %2252 }
 0x489   :  { %v2582_v22 = vpop.eup %2254  ;;  %v967_v23 = vsel %vm291_vm6, %v2580_v21, 0.0 }
 0x48a   :  { %968 = vadd.xlane.f32.xlu1 %v967_v23  ;;  %v964_v24 = vsel %vm291_vm6, %v2582_v22, 0.0 }
 0x48b   :  { %965 = vadd.xlane.f32.xlu0 %v964_v24 }
 0x49b   :  { %1518 = vrot.lane.b32.xlu1 %v2496_v56, %s2379_s29 }
 0x4a1   :  { %1442 = vrot.lane.b32.xlu0 %v2488_v53, %s2379_s29 }
 0x4af   :  { %v948_v28 = vpop.xlane.xlu0 %947 }
 0x4b0   :  { %2256 = vrcp.f32 %v948_v28 }
 0x4b7   :  { %v951_v30 = vpop.xlane.xlu1 %950 }
 0x4b8   :  { %2258 = vrcp.f32 %v951_v30 }
 0x4bd   :  { %v2257_v31 = vpop.eup %2256 }
 0x4be   :  { %v978_v32 = vmul.f32 %v2257_v31, %v2566_v51 }
 0x4c0   :  { %2138 = vmatmul.mubr.msk.f32.vlgmr.msra.gmra.mxu0 %vm291_vm6, %v978_v32 }
 0x4c1   :  { %2146 = vmatpush3.msra.mxu0 %v1139_v25  ;;  %2147 = vmatprep.mubr.msk.f32.mxu0 %vm2374_vm5, %v2373_v45  ;;  %v2013_v25 = vld [vmem:[#allocation7 + $0x3] ss:$0 sm:$0xff] }
 0x4c2   :  { %2155 = vmatprep.subr.mxu0 %v2373_v45 }
 0x4c5   :  { %v2259_v53 = vpop.eup %2258 }
 0x4c6   :  { %v979_v56 = vmul.f32 %v2259_v53, %v2570_v50 }
 0x4c8   :  { %2143 = vmatmul.mubr.msk.f32.vlgmr.msra.gmra.mxu1 %vm291_vm6, %v979_v56 }
 0x4c9   :  { %2151 = vmatpush3.msra.mxu1 %v1215_v27  ;;  %2152 = vmatprep.mubr.msk.f32.mxu1 %vm2374_vm5, %v2373_v45 }
 0x4ca   :  { %2160 = vmatprep.subr.mxu1 %v2373_v45 }
 0x507   :  { %v957_v33 = vpop.xlane.xlu1 %956 }
 0x508   :  { %2260 = vrcp.f32 %v957_v33 }
 0x50b   :  { %v954_v34 = vpop.xlane.xlu0 %953 }
 0x50c   :  { %2262 = vrcp.f32 %v954_v34 }
 0x50f   :  { %v963_v35 = vpop.xlane.xlu1 %962 }
 0x510   :  { %2264 = vrcp.f32 %v963_v35  ;;  %v960_v36 = vpop.xlane.xlu0 %959 }
 0x511   :  { %2266 = vrcp.f32 %v960_v36 }
 0x513   :  { %v969_v37 = vpop.xlane.xlu1 %968 }
 0x514   :  { %2268 = vrcp.f32 %v969_v37  ;;  %v966_v38 = vpop.xlane.xlu0 %965 }
 0x515   :  { %v2261_v39 = vpop.eup %2260  ;;  %2270 = vrcp.f32 %v966_v38 }
 0x516   :  { %v981_v40 = vmul.f32 %v2261_v39, %v2245_v13 }
 0x517   :  { %v1519_v48 = vpop.permute.xlu1 %1518 }
 0x518   :  { %2153 = vmatmul.mubr.msk.f32.vlgmr.msra.gmra.mxu1 %vm291_vm6, %v981_v40  ;;  %v1443_v49 = vpop.permute.xlu0 %1442  ;;  %v1772_v40 = vld [vmem:[%s2707_s5 + $0x18] sm:$0xff] }
 0x519   :  { %v2263_v41 = vpop.eup %2262  ;;  %2161 = vmatpush3.msra.mxu1 %v1367_v29  ;;  %2162 = vmatprep.mubr.msk.f32.mxu1 %vm2374_vm5, %v2373_v45 }
 0x51a   :  { %v980_v42 = vmul.f32 %v2263_v41, %v2247_v15  ;;  %2170 = vmatprep.subr.mxu1 %v2373_v45  ;;  %v1771_v41 = vld [vmem:[%s2707_s5 + $0x10] sm:$0xff] }
 0x51c   :  { %2148 = vmatmul.mubr.msk.f32.vlgmr.msra.gmra.mxu0 %vm291_vm6, %v980_v42  ;;  %v1770_v42 = vld [vmem:[%s2707_s5 + $0x8] sm:$0xff] }
 0x51d   :  { %v2265_v43 = vpop.eup %2264  ;;  %2156 = vmatpush3.msra.mxu0 %v1291_v26  ;;  %2157 = vmatprep.mubr.msk.f32.mxu0 %vm2374_vm5, %v2373_v45 }
 0x51e   :  { %v2267_v44 = vpop.eup %2266  ;;  %2165 = vmatprep.subr.mxu0 %v2373_v45  ;;  %v983_v46 = vmul.f32 %v2265_v43, %v2249_v17  ;;  %v1769_v43 = vld [vmem:[%s2707_s5] sm:$0xff] }
 0x51f   :  { %v982_v47 = vmul.f32 %v2267_v44, %v2251_v18  ;;  %v1867_v44 = vld [vmem:[%s2708_s6 + $0x38] sm:$0xff] }
 0x520   :  { %2163 = vmatmul.mubr.msk.f32.vlgmr.msra.gmra.mxu1 %vm291_vm6, %v983_v46  ;;  %v1866_v46 = vld [vmem:[%s2708_s6 + $0x30] sm:$0xff] }
 0x521   :  { %v2269_v51 = vpop.eup %2268  ;;  %2158 = vmatmul.mubr.msk.f32.vlgmr.msra.gmra.mxu0 %vm291_vm6, %v982_v47  ;;  %2171 = vmatpush3.msra.mxu1 %v1519_v48  ;;  %v1865_v47 = vld [vmem:[%s2708_s6 + $0x28] sm:$0xff]  ;;  %v1864_v48 = vld [vmem:[%s2708_s6 + $0x20] sm:$0xff] }
 0x522   :  { %v2271_v50 = vpop.eup %2270  ;;  %2166 = vmatpush3.msra.mxu0 %v1443_v49  ;;  %2167 = vmatprep.mubr.msk.f32.mxu0 %vm2374_vm5, %v2373_v45  ;;  %v985_v52 = vmul.f32 %v2269_v51, %v2580_v21 }
 0x523   :  { %2172 = vmatprep.mubr.msk.f32.mxu1 %vm2374_vm5, %v2373_v45  ;;  %v984_v54 = vmul.f32 %v2271_v50, %v2582_v22  ;;  %2175 = vmatprep.subr.mxu0 %v1629_v60  ;;  %v1628_v45 = vld [vmem:[%s2706_s4 + $0x10] sm:$0xff] }
 0x524   :  { %2173 = vmatmul.mubr.msk.f32.vlgmr.msra.gmra.mxu1 %vm291_vm6, %v985_v52  ;;  %2186 = vmatprep.subr.mxu1 %v1772_v40 }
 0x525   :  { %2168 = vmatmul.mubr.msk.f32.vlgmr.msra.gmra.mxu0 %vm291_vm6, %v984_v54  ;;  %2187 = vmatpush3.msra.mxu1 %v1772_v40 }
 0x526   :  { %2176 = vmatpush3.msra.mxu0 %v1629_v60  ;;  %2188 = vmatprep.subr.mxu1 %v1771_v41 }
 0x527   :  { %2177 = vmatprep.subr.mxu0 %v1628_v45  ;;  %2189 = vmatpush3.msra.mxu1 %v1771_v41 }
 0x528   :  { %2178 = vmatpush3.msra.mxu0 %v1628_v45  ;;  %2190 = vmatprep.subr.mxu1 %v1770_v42 }
 0x529   :  { %2179 = vmatprep.subr.mxu0 %v1627_v61  ;;  %2191 = vmatpush3.msra.mxu1 %v1770_v42 }
 0x52a   :  { %2180 = vmatpush3.msra.mxu0 %v1627_v61  ;;  %2192 = vmatprep.subr.mxu1 %v1769_v43 }
 0x52b   :  { %2181 = vmatprep.subr.mxu0 %v1626_v63  ;;  %2193 = vmatpush3.msra.mxu1 %v1769_v43 }
 0x52c   :  { %2182 = vmatpush3.msra.mxu0 %v1626_v63 }
 0x52d   :  { %2197 = vmatprep.subr.mxu0 %v1867_v44 }
 0x580   :  { %v1058_v55 = vpop.f32.mrf.mxu0 }
 0x582   :  { %v2139_v57 = vpop.f32.mrf.mxu0 }
 0x588   :  { %v1134_v58 = vpop.f32.mrf.mxu1 }
 0x58a   :  { %v2144_v59 = vpop.f32.mrf.mxu1 }
 0x5d8   :  { %v1286_v62 = vpop.f32.mrf.mxu1 }
 0x5d9   :  { %1598 = vrot.lane.b32.xlu1 %v1286_v62, %s2371_s12 }
 0x5da   :  { %v2154_v2 = vpop.f32.mrf.mxu1 }
 0x5dc   :  { %v1210_v3 = vpop.f32.mrf.mxu0 }
 0x5dd   :  { %1596 = vrot.lane.b32.xlu0 %v1210_v3, %s2371_s12 }
 0x5de   :  { %v2149_v4 = vpop.f32.mrf.mxu0 }
 0x5df   :  { %v2016_v4 = vld [vmem:[#allocation7 + $0x4] ss:$0 sm:$0xff] }
 0x5e0   :  { %v1438_v5 = vpop.f32.mrf.mxu1 }
 0x5e1   :  { %v1362_v6 = vpop.f32.mrf.mxu0  ;;  %1606 = vrot.lane.b32.xlu1 %v1438_v5, %s2367_s27 }
 0x5e2   :  { %1604 = vrot.lane.b32.xlu0 %v1362_v6, %s2367_s27  ;;  %v2164_v7 = vpop.f32.mrf.mxu1 }
 0x5e3   :  { %v2159_v8 = vpop.f32.mrf.mxu0  ;;  %v2017_v7 = vld [vmem:[#allocation7 + $0x5] ss:$0 sm:$0xff] }
 0x5e4   :  { %v1590_v9 = vpop.f32.mrf.mxu1 }
 0x5e5   :  { %v1514_v10 = vpop.f32.mrf.mxu0  ;;  %1614 = vrot.lane.b32.xlu1 %v1590_v9, %s2380_s16 }
 0x5e6   :  { %1612 = vrot.lane.b32.xlu0 %v1514_v10, %s2380_s16  ;;  %v2174_v11 = vpop.f32.mrf.mxu1 }
 0x5e7   :  { %v2169_v12 = vpop.f32.mrf.mxu0 }
 0x64b   :  { %v1599_v13 = vpop.permute.xlu1 %1598 }
 0x64c   :  { %v1619_v17 = vsel %vm291_vm6, %v1134_v58, %v1599_v13 }
 0x64f   :  { %v1597_v14 = vpop.permute.xlu0 %1596 }
 0x650   :  { %v1618_v18 = vsel %vm291_vm6, %v1058_v55, %v1597_v14  ;;  %v1863_v14 = vld [vmem:[%s2708_s6 + $0x18] sm:$0xff] }
 0x653   :  { %v1607_v15 = vpop.permute.xlu1 %1606 }
 0x654   :  { %v1605_v16 = vpop.permute.xlu0 %1604  ;;  %v1622_v19 = vsel %vm1620_vm7, %v1619_v17, %v1607_v15  ;;  %v1862_v15 = vld [vmem:[%s2708_s6 + $0x10] sm:$0xff]  ;;  %v1860_v17 = vld [vmem:[%s2708_s6] sm:$0xff] }
 0x655   :  { %v1621_v21 = vsel %vm1620_vm7, %v1618_v18, %v1605_v16  ;;  %v1861_v16 = vld [vmem:[%s2708_s6 + $0x8] sm:$0xff]  ;;  %v2018_v18 = vld [vmem:[#allocation7 + $0x6] ss:$0 sm:$0xff]  ;;  %s2340_s6 = scalar_lea.vmem %s1964_s15, 256 }
 0x656   :  { %p2341_p1 = scmp.ne.s32.totalorder %s1964_s15, %s2340_s6  ;;  %p2346_p3 = scmp.lt.s32.totalorder %s2340_s6, %s2340_s6 }
 0x657   :  { %v1615_v20 = vpop.permute.xlu1 %1614 }
 0x658   :  { %v1625_v22 = vsel %vm1623_vm8, %v1622_v19, %v1615_v20  ;;  %v1613_v23 = vpop.permute.xlu0 %1612  ;;  %p2347_p4 = por %p2346_p3, %p2345_p2 }
 0x659   :  { %v1624_v24 = vsel %vm1623_vm8, %v1621_v21, %v1613_v23 }
 0x65a   :  { %2183 = vmatprep.mubr.msk.f32.mxu0 %vm76_vm0, %v1624_v24  ;;  %p2348_p5 = pnand %p2347_p4, %p2341_p1 }
 0x65b   :  { %2184 = vmatmul.mubr.msk.f32.vlgmr.msra.gmra.mxu0 %vm76_vm0, %v1625_v22 }
 0x65c   :  { %2198 = vmatpush3.msra.mxu0 %v1867_v44 }
 0x65d   :  { %2199 = vmatprep.subr.mxu0 %v1866_v46 }
 0x65e   :  { %2200 = vmatpush3.msra.mxu0 %v1866_v46 }
 0x65f   :  { %2201 = vmatprep.subr.mxu0 %v1865_v47 }
 0x660   :  { %2202 = vmatpush3.msra.mxu0 %v1865_v47 }
 0x661   :  { %2203 = vmatprep.subr.mxu0 %v1864_v48 }
 0x662   :  { %2204 = vmatpush3.msra.mxu0 %v1864_v48 }
 0x663   :  { %2205 = vmatprep.subr.mxu0 %v1863_v14 }
 0x664   :  { %2206 = vmatpush3.msra.mxu0 %v1863_v14 }
 0x665   :  { %2207 = vmatprep.subr.mxu0 %v1862_v15 }
 0x666   :  { %2208 = vmatpush3.msra.mxu0 %v1862_v15 }
 0x667   :  { %2209 = vmatprep.subr.mxu0 %v1861_v16 }
 0x668   :  { %2210 = vmatpush3.msra.mxu0 %v1861_v16 }
 0x669   :  { %2211 = vmatprep.subr.mxu0 %v1860_v17 }
 0x66a   :  { %2212 = vmatpush3.msra.mxu0 %v1860_v17 }
 0x71b   :  { %v2185_v26 = vpop.f32.mrf.mxu0 }
 0x71c   :  { %v1712_v27 = vadd.f32 %v2185_v26, %v2013_v25 }
 0x71d   :  { %v1706_v28 = vpop.f32.mrf.mxu0 }
 0x71e   :  { %v2641_v29 = vadd.f32 %v1712_v27, %v2438_v1  ;;  %v1707_v30 = vadd.f32 %v2013_v25, %v1706_v28  ;;  %v2021_v25 = vld [vmem:[#allocation7 + $0x7] ss:$0 sm:$0xff] }
 0x720   :  { %v2644_v31 = vadd.f32 %v1707_v30, %v2436_v0  ;;  %v1720_v32 = vsel %vm76_vm0, %v2641_v29, 0.0 }
 0x721   :  { %1721 = vadd.xlane.f32.xlu1 %v1720_v32 }
 0x722   :  { %v1717_v53 = vsel %vm76_vm0, %v2644_v31, 0.0 }
 0x723   :  { %1718 = vadd.xlane.f32.xlu0 %v1717_v53 }
 0x7aa   :  { %v1722_v56 = vpop.xlane.xlu1 %1721 }
 0x7ab   :  { %v1724_v33 = vmul.f32 0.03125, %v1722_v56 }
 0x7ac   :  { %v1719_v34 = vpop.xlane.xlu0 %1718 }
 0x7ad   :  { %v1723_v35 = vmul.f32 0.03125, %v1719_v34  ;;  %v1726_v36 = vsub.f32 %v2641_v29, %v1724_v33 }
 0x7af   :  { %v1725_v1 = vsub.f32 %v2644_v31, %v1723_v35  ;;  %v1728_v38 = vmul.f32 %v1726_v36, %v1726_v36  ;;  %v1756_v9 = vmul.f32 %v2016_v4, %v1726_v36 }
 0x7b1   :  { %v1727_v37 = vmul.f32 %v1725_v1, %v1725_v1  ;;  %v1732_v39 = vsel %vm76_vm0, %v1728_v38, 0.0  ;;  %v1755_v5 = vmul.f32 %v2016_v4, %v1725_v1 }
 0x7b3   :  { %v1729_v0 = vsel %vm76_vm0, %v1727_v37, 0.0 }
 0x7b4   :  { %1730 = vadd.xlane.f32.xlu0 %v1729_v0 }
 0x7b8   :  { %1733 = vadd.xlane.f32.xlu0 %v1732_v39 }
 0x83d   :  { %v1731_v51 = vpop.xlane.xlu0 %1730 }
 0x83e   :  { %v1735_v49 = vmul.f32 0.032258064, %v1731_v51 }
 0x840   :  { %2272 = vrsqrt.f32 %v1735_v49  ;;  %vm1739_vm9 = vcmp.eq.f32.partialorder %v1735_v49, inf  ;;  %v1742_v57 = vand.u32 2147483648, %v1735_v49  ;;  %vm1741_vm10 = vcmp.eq.f32.partialorder %v1735_v49, 0.0 }
 0x841   :  { %v1734_v50 = vpop.xlane.xlu0 %1733 }
 0x842   :  { %v1736_v52 = vmul.f32 0.032258064, %v1734_v50 }
 0x844   :  { %2274 = vrsqrt.f32 %v1736_v52  ;;  %vm1746_vm11 = vcmp.eq.f32.partialorder %v1736_v52, inf  ;;  %v1749_v62 = vand.u32 2147483648, %v1736_v52  ;;  %vm1748_vm12 = vcmp.eq.f32.partialorder %v1736_v52, 0.0 }
 0x84d   :  { %v2273_v54 = vpop.eup %2272 }
 0x84e   :  { %v1738_v55 = vmul.f32 %v2273_v54, %v1735_v49 }
 0x850   :  { %v1740_v58 = vsel %vm1739_vm9, %v1735_v49, %v1738_v55 }
 0x851   :  { %v2275_v59 = vpop.eup %2274  ;;  %v1743_v60 = vsel %vm1741_vm10, %v1742_v57, %v1740_v58 }
 0x852   :  { %v1757_v45 = vadd.f32 1e-06, %v1743_v60  ;;  %v1745_v61 = vmul.f32 %v2275_v59, %v1736_v52 }
 0x854   :  { %2276 = vrcp.f32 %v1757_v45  ;;  %v1747_v63 = vsel %vm1746_vm11, %v1736_v52, %v1745_v61 }
 0x855   :  { %v1750_v2 = vsel %vm1748_vm12, %v1749_v62, %v1747_v63 }
 0x856   :  { %v1758_v3 = vadd.f32 1e-06, %v1750_v2 }
 0x858   :  { %2278 = vrcp.f32 %v1758_v3 }
 0x861   :  { %v2277_v6 = vpop.eup %2276 }
 0x862   :  { %v1761_v8 = vmul.f32 %v2277_v6, %v1755_v5 }
 0x864   :  { %v1767_v10 = vadd.f32 %v2017_v7, %v1761_v8 }
 0x865   :  { %v2279_v11 = vpop.eup %2278 }
 0x866   :  { %v1762_v12 = vmul.f32 %v2279_v11, %v1756_v9  ;;  %2194 = vmatprep.mubr.msk.f32.mxu1 %vm76_vm0, %v1767_v10 }
 0x868   :  { %v1768_v13 = vadd.f32 %v2017_v7, %v1762_v12 }
 0x86a   :  { %2195 = vmatmul.mubr.msk.f32.vlgmr.msra.gmra.mxu1 %vm76_vm0, %v1768_v13 }
 0x92a   :  { %v2196_v19 = vpop.f32.mrf.mxu1 }
 0x92b   :  { %v1855_v20 = vadd.f32 %v2196_v19, %v2018_v18 }
 0x92c   :  { %v1849_v21 = vpop.f32.mrf.mxu1 }
 0x92d   :  { %v1850_v22 = vadd.f32 %v2018_v18, %v1849_v21  ;;  %v1859_v24 = vmax.f32 %v1855_v20, 0.0 }
 0x92f   :  { %v1858_v23 = vmax.f32 %v1850_v22, 0.0 }
 0x931   :  { %2213 = vmatprep.mubr.msk.f32.mxu0 %vm1872_vm13, %v1858_v23 }
 0x932   :  { %2214 = vmatmul.mubr.msk.f32.vlgmr.msra.gmra.mxu0 %vm1872_vm13, %v1859_v24 }
 0x9f2   :  { %v2215_v26 = vpop.f32.mrf.mxu0 }
 0x9f3   :  { %v1951_v27 = vadd.f32 %v2215_v26, %v2021_v25 }
 0x9f4   :  { %v1945_v28 = vpop.f32.mrf.mxu0 }
 0x9f5   :  { %v1955_v30 = vadd.f32 %v1951_v27, %v2641_v29  ;;  %v1946_v32 = vadd.f32 %v2021_v25, %v1945_v28 }
 0x9f7   :  { %1957 = vst.msk [vmem:[#allocation8 + $0x8] sm:$0xff] %vm76_vm0, %v1955_v30  ;;  %v1954_v53 = vadd.f32 %v1946_v32, %v2644_v31 }
 0x9f9   :  { %1956 = vst.msk [vmem:[#allocation8] sm:$0xff] %vm76_vm0, %v1954_v53 }
 0x9fa   :  { %2351 = shalt.err (!%p2348_p5)
}
 0x9fb   :  { %1969 = dma.vmem_to_hbm [thread:$0]  %s1964_s15, 256, %s2709_s7, [#allocation4], %s2370_s11, %s2370_s11, %s2371_s12  }
 0x9fc   :  { %2364 = dma.done.wait [#allocation4], 256  }
 0x9fd   :  { %2365 = vsyncadd [#allocation4], 4294967040 }
 0x9fe   :  { %1973 = vsyncpa [#allocation3], 1 }
 0x9ff   :  { %1974 = vsyncpa [#allocation6], 1 }
 0xa00   :  { %1975 = vsyncpa [#allocation4], 1 }

</bundles_post_ra>
